<compile_context>
chip_gen: v7x
topology: tpu7x:2x2x1
jax: 0.10.0
libtpu: 0.0.40
codegen_flags: <defaults>
</compile_context>

<pallas_src>
import functools

import jax
import jax.numpy as jnp
from jax import lax
from jax.experimental import pallas as pl
from jax.experimental.pallas import tpu as pltpu


def _focal_loss_kernel(logits_ref, targets_ref, out_ref, acc_ref, *,
                       alpha, gamma, n_valid, block_rows, tiles_per_core,
                       has_padding):
    t_id = pl.program_id(1)

    @pl.when(t_id == 0)
    def _init():
        acc_ref[...] = jnp.zeros_like(acc_ref)

    logits = logits_ref[...].astype(jnp.float32)           # (T, C)
    tgt = targets_ref[...]                                  # (T, 1) int32
    t, c = logits.shape

    # --- numerically-stable cross-entropy, no full log_softmax materialized ---
    row_max = jnp.max(logits, axis=-1, keepdims=True)                    # (T, 1)
    shifted = logits - row_max                                           # (T, C)
    lse = jnp.log(jnp.sum(jnp.exp(shifted), axis=-1, keepdims=True))     # (T, 1)
    # TODO(synk): if a v7x bundle dump shows this kernel EUP-bound, feed the
    # exp above in bf16 (keep the max-subtract and the sum in f32).

    # gather logits[i, targets[i]] with a single select (no dynamic gather on TPU)
    col_ids = lax.broadcasted_iota(jnp.int32, (t, c), 1)                 # (T, C)
    tgt_logit = jnp.sum(jnp.where(col_ids == tgt, logits, 0.0),
                        axis=-1, keepdims=True)                          # (T, 1)

    ce = (row_max + lse) - tgt_logit                                     # (T, 1)

    # --- focal weighting ---
    pt = jnp.exp(-ce)
    one_minus_pt = jnp.maximum(1.0 - pt, 0.0)      # clamp: frac gamma would NaN
    g = float(gamma)
    if g.is_integer() and 0.0 <= g <= 8.0:
        # integer exponent -> repeated VPU multiply (no exp/log power path)
        w = jnp.ones_like(one_minus_pt)
        for _ in range(int(g)):
            w = w * one_minus_pt
    else:
        w = jnp.power(one_minus_pt, g)
    focal = w * ce
    if alpha != 1.0:
        focal = alpha * focal                                            # (T, 1)

    # --- per-step vector accumulation (plain VPU add, no reduce) ---
    if has_padding:
        global_tile = pl.program_id(0) * tiles_per_core + t_id
        reaches_pad = (global_tile + 1) * block_rows > n_valid

        @pl.when(jnp.logical_not(reaches_pad))
        def _acc_plain():
            acc_ref[...] += focal

        @pl.when(reaches_pad)
        def _acc_masked():
            row_ids = global_tile * block_rows + lax.broadcasted_iota(
                jnp.int32, (t, 1), 0)
            acc_ref[...] += jnp.where(row_ids < n_valid, focal, 0.0)
    else:
        acc_ref[...] += focal

    # --- one reduce + lane-dense write-back of this core's partial sum ---
    @pl.when(t_id == pl.num_programs(1) - 1)
    def _finish():
        partial = jnp.sum(acc_ref[...])            # single XLU reduce per core
        out_ref[...] = jnp.full((8, 128), partial, dtype=jnp.float32)


def _vmem_capacity_bytes():
    """Best-effort physical VMEM query; conservative fallback (v7x per-TC)."""
    try:
        info = pltpu.get_tpu_info()
        for name in ("vmem_capacity_bytes", "vmem_bytes", "vmem_size_bytes"):
            v = getattr(info, name, None)
            if v:
                return int(v)
    except Exception:
        pass
    return 64 << 20


def focal_loss(logits, targets, *, alpha=1.0, gamma=2.0, block_rows=None,
               num_cores=None):
    """logits (N, C) float, targets (N,) int -> scalar f32 mean focal loss."""
    n, c = logits.shape
    itemsize = jnp.dtype(logits.dtype).itemsize
    sub = max(8, 32 // itemsize)                 # packed-sublane multiple per dtype
    lanes = ((c + 127) // 128) * 128             # lane-padded row width in VMEM

    # Per-row VMEM bytes: double-buffered logits + double-buffered lane-padded
    # targets + lane-padded accumulator + headroom for f32 intermediates.
    per_row_vmem = (2 * lanes * itemsize) + (2 * 128 * 4) + (128 * 4) + (2 * lanes * 4)

    vmem_cap = _vmem_capacity_bytes()
    if vmem_cap >= (100 << 20):                  # v5e / v6e: 128 MiB physical VMEM
        vmem_target, hbm_block_budget, limit_cap = 56 << 20, 8 << 20, 64 << 20
    else:                                        # v7x (64 MiB per TC) / unknown
        vmem_target, hbm_block_budget, limit_cap = 30 << 20, 5 << 20, 40 << 20

    if block_rows is None:
        rows = min(vmem_target // per_row_vmem,
                   hbm_block_budget // max(1, c * itemsize),
                   16384)
        rows = max(sub, (rows // sub) * sub)
        rows = min(rows, ((n + sub - 1) // sub) * sub)   # don't over-pad tiny batches
        block_rows = rows
    else:
        block_rows = max(sub, (int(block_rows) // sub) * sub)

    total_tiles = -(-n // block_rows)            # cdiv
    if num_cores is None:
        num_cores = 2 if total_tiles >= 2 else 1  # megacore split; harmless on 1-TC
    num_cores = max(1, min(int(num_cores), total_tiles))
    tiles_per_core = -(-total_tiles // num_cores)
    n_pad = num_cores * tiles_per_core * block_rows

    targets = targets.astype(jnp.int32)
    if n_pad != n:
        logits = jnp.pad(logits, ((0, n_pad - n), (0, 0)))
        targets = jnp.pad(targets, ((0, n_pad - n),))
    tgt2d = targets.reshape(n_pad, 1)

    footprint = block_rows * per_row_vmem + (2 << 20)
    vmem_limit = int(min(max(footprint, 16 << 20), limit_cap))

    cost = pl.CostEstimate(
        flops=int(7 * n_pad * c + 12 * n_pad),
        transcendentals=int(n_pad * c + 2 * n_pad),
        bytes_accessed=int(n_pad * c * itemsize + n_pad * 4
                           + num_cores * 8 * 128 * 4),
    )

    kernel = functools.partial(
        _focal_loss_kernel,
        alpha=float(alpha), gamma=float(gamma), n_valid=int(n),
        block_rows=int(block_rows), tiles_per_core=int(tiles_per_core),
        has_padding=bool(n_pad != n))

    out = pl.pallas_call(
        kernel,
        out_shape=jax.ShapeDtypeStruct((num_cores * 8, 128), jnp.float32),
        grid_spec=pltpu.PrefetchScalarGridSpec(
            num_scalar_prefetch=0,
            grid=(num_cores, tiles_per_core),
            in_specs=[
                pl.BlockSpec((block_rows, c),
                             lambda ci, ti: (ci * tiles_per_core + ti, 0)),
                pl.BlockSpec((block_rows, 1),
                             lambda ci, ti: (ci * tiles_per_core + ti, 0)),
            ],
            out_specs=pl.BlockSpec((8, 128), lambda ci, ti: (ci, 0)),
            scratch_shapes=[pltpu.VMEM((block_rows, 1), jnp.float32)],
        ),
        compiler_params=pltpu.CompilerParams(
            dimension_semantics=("parallel", "arbitrary"),
            vmem_limit_bytes=vmem_limit,
        ),
        cost_estimate=cost,
    )(logits, tgt2d)   # logits in native dtype; cast to f32 happens in-kernel

    # Per-core partial sums live at rows 0, 8, 16, ... of column 0.
    return jnp.sum(out[::8, 0]) / n


def _focal_loss_ref(logits, targets, *, alpha=1.0, gamma=2.0):
    """Pure-JAX reference matching torch F.cross_entropy + focal weighting."""
    lse = jax.nn.logsumexp(logits.astype(jnp.float32), axis=-1)
    ce = lse - logits.astype(jnp.float32)[jnp.arange(logits.shape[0]), targets]
    pt = jnp.exp(-ce)
    return jnp.mean(alpha * (1.0 - pt) ** gamma * ce)


if __name__ == "__main__":
    key = jax.random.PRNGKey(0)
    k_logits, k_tgt = jax.random.split(key)

    # small demo shapes: batch=8 samples, 32 classes
    N, C = 8, 32
    logits = jax.random.normal(k_logits, (N, C), dtype=jnp.float32)
    targets = jax.random.randint(k_tgt, (N,), 0, C, dtype=jnp.int32)

    out = jax.block_until_ready(focal_loss(logits, targets, alpha=1.0, gamma=2.0))
    ref = _focal_loss_ref(logits, targets, alpha=1.0, gamma=2.0)
    assert jnp.allclose(out, ref, rtol=1e-5, atol=1e-5), (out, ref)

    # multi-tile path: 2-way parallel split + padded / masked trailing tiles
    N2, C2 = 37, 32
    logits2 = jax.random.normal(k_logits, (N2, C2), dtype=jnp.float32)
    targets2 = jax.random.randint(k_tgt, (N2,), 0, C2, dtype=jnp.int32)
    out2 = jax.block_until_ready(
        focal_loss(logits2, targets2, alpha=0.5, gamma=2.0, block_rows=16))
    ref2 = _focal_loss_ref(logits2, targets2, alpha=0.5, gamma=2.0)
    assert jnp.allclose(out2, ref2, rtol=1e-5, atol=1e-5), (out2, ref2)

    print("KERNEL_OK")
</pallas_src>

<mosaic_0001>
module attributes {stable_mosaic.version = 11 : i64} {
  func.func @_focal_loss_kernel(%arg0: i32, %arg1: i32, %arg2: memref<8x32xf32, #tpu.memory_space<vmem>>, %arg3: memref<8x1xi32, #tpu.memory_space<vmem>>, %arg4: memref<8x128xf32, #tpu.memory_space<vmem>>, %arg5: memref<8x1xf32, #tpu.memory_space<vmem>>) attributes {dimension_semantics = [#tpu.dimension_semantics<parallel>, #tpu.dimension_semantics<arbitrary>], iteration_bounds = array<i64: 1, 1>, scalar_prefetch = 0 : i64, scratch_operands = 1 : i64, tpu.core_type = #tpu.core_type<tc>, window_params = [{transform_indices = @transform_0, window_bounds = array<i64: 8, 32>}, {transform_indices = @transform_1, window_bounds = array<i64: 8, 1>}, {transform_indices = @transform_2, window_bounds = array<i64: 8, 128>}]} {
    %c0_i32 = arith.constant 0 : i32
    %0 = arith.cmpi eq, %arg1, %c0_i32 : i32
    %1 = arith.extui %0 : i1 to i32
    %c0_i32_0 = arith.constant 0 : i32
    %2 = arith.cmpi ne, %1, %c0_i32_0 : i32
    scf.if %2 {
      %cst_17 = arith.constant 0.000000e+00 : f32
      %39 = vector.broadcast %cst_17 : f32 to vector<8x1xf32>
      %c0_18 = arith.constant 0 : index
      %c0_19 = arith.constant 0 : index
      %40 = vector.load %arg5[%c0_18, %c0_19] : memref<8x1xf32, #tpu.memory_space<vmem>>, vector<8x1xf32>
      tpu.vector_store %arg5[%c0_18, %c0_19], %39 {strides = array<i32>} : memref<8x1xf32, #tpu.memory_space<vmem>>, vector<8x1xf32>,
    } else {
    }
    %c0 = arith.constant 0 : index
    %c0_1 = arith.constant 0 : index
    %3 = vector.load %arg2[%c0, %c0_1] : memref<8x32xf32, #tpu.memory_space<vmem>>, vector<8x32xf32>
    %c0_2 = arith.constant 0 : index
    %c0_3 = arith.constant 0 : index
    %4 = vector.load %arg3[%c0_2, %c0_3] : memref<8x1xi32, #tpu.memory_space<vmem>>, vector<8x1xi32>
    %cst = arith.constant dense<0xFF800000> : vector<8xf32>
    %5 = vector.multi_reduction <maximumf>, %3, %cst [1] : vector<8x32xf32> to vector<8xf32>
    %6 = vector.shape_cast %5 : vector<8xf32> to vector<8x1xf32>
    %7 = vector.broadcast %6 : vector<8x1xf32> to vector<8x32xf32>
    %8 = arith.subf %3, %7 : vector<8x32xf32>
    %9 = math.exp %8 : vector<8x32xf32>
    %cst_4 = arith.constant dense<0.000000e+00> : vector<8xf32>
    %10 = vector.multi_reduction <add>, %9, %cst_4 [1] : vector<8x32xf32> to vector<8xf32>
    %11 = vector.shape_cast %10 : vector<8xf32> to vector<8x1xf32>
    %12 = math.log %11 : vector<8x1xf32>
    %13 = tpu.iota {dimensions = array<i32: 1>} : vector<8x32xi32>
    %14 = vector.broadcast %4 : vector<8x1xi32> to vector<8x32xi32>
    %15 = arith.cmpi eq, %13, %14 : vector<8x32xi32>
    %cst_5 = arith.constant 0.000000e+00 : f32
    %16 = vector.broadcast %cst_5 : f32 to vector<8x32xf32>
    %17 = arith.select %15, %3, %16 : vector<8x32xi1>, vector<8x32xf32>
    %cst_6 = arith.constant dense<0.000000e+00> : vector<8xf32>
    %18 = vector.multi_reduction <add>, %17, %cst_6 [1] : vector<8x32xf32> to vector<8xf32>
    %19 = vector.shape_cast %18 : vector<8xf32> to vector<8x1xf32>
    %20 = arith.addf %6, %12 : vector<8x1xf32>
    %21 = arith.subf %20, %19 : vector<8x1xf32>
    %cst_7 = arith.constant 0.000000e+00 : f32
    %22 = vector.broadcast %cst_7 : f32 to vector<8x1xf32>
    %23 = arith.subf %22, %21 : vector<8x1xf32>
    %24 = math.exp %23 : vector<8x1xf32>
    %cst_8 = arith.constant 1.000000e+00 : f32
    %25 = vector.broadcast %cst_8 : f32 to vector<8x1xf32>
    %26 = arith.subf %25, %24 : vector<8x1xf32>
    %cst_9 = arith.constant 0.000000e+00 : f32
    %27 = vector.broadcast %cst_9 : f32 to vector<8x1xf32>
    %28 = arith.maximumf %26, %27 : vector<8x1xf32>
    %cst_10 = arith.constant 1.000000e+00 : f32
    %29 = vector.broadcast %cst_10 : f32 to vector<8x1xf32>
    %30 = arith.mulf %29, %28 : vector<8x1xf32>
    %31 = arith.mulf %30, %28 : vector<8x1xf32>
    %32 = arith.mulf %31, %21 : vector<8x1xf32>
    %c0_11 = arith.constant 0 : index
    %c0_12 = arith.constant 0 : index
    %33 = vector.load %arg5[%c0_11, %c0_12] : memref<8x1xf32, #tpu.memory_space<vmem>>, vector<8x1xf32>
    %34 = arith.addf %33, %32 : vector<8x1xf32>
    %c0_13 = arith.constant 0 : index
    %c0_14 = arith.constant 0 : index
    %35 = vector.load %arg5[%c0_13, %c0_14] : memref<8x1xf32, #tpu.memory_space<vmem>>, vector<8x1xf32>
    tpu.vector_store %arg5[%c0_13, %c0_14], %34 {strides = array<i32>} : memref<8x1xf32, #tpu.memory_space<vmem>>, vector<8x1xf32>,
    %c0_i32_15 = arith.constant 0 : i32
    %36 = arith.cmpi eq, %arg1, %c0_i32_15 : i32
    %37 = arith.extui %36 : i1 to i32
    %c0_i32_16 = arith.constant 0 : i32
    %38 = arith.cmpi ne, %37, %c0_i32_16 : i32
    scf.if %38 {
      %c0_17 = arith.constant 0 : index
      %c0_18 = arith.constant 0 : index
      %39 = vector.load %arg5[%c0_17, %c0_18] : memref<8x1xf32, #tpu.memory_space<vmem>>, vector<8x1xf32>
      %40 = vector.shape_cast %39 : vector<8x1xf32> to vector<1x8x1xf32>
      %cst_19 = arith.constant dense<0.000000e+00> : vector<1xf32>
      %41 = vector.multi_reduction <add>, %40, %cst_19 [1, 2] : vector<1x8x1xf32> to vector<1xf32>
      %42 = vector.shape_cast %41 : vector<1xf32> to vector<1x1x1xf32>
      %43 = vector.extract %42[0, 0, 0] : f32 from vector<1x1x1xf32>
      %44 = vector.broadcast %43 : f32 to vector<8x128xf32>
      %c0_20 = arith.constant 0 : index
      %c0_21 = arith.constant 0 : index
      %45 = vector.load %arg4[%c0_20, %c0_21] : memref<8x128xf32, #tpu.memory_space<vmem>>, vector<8x128xf32>
      tpu.vector_store %arg4[%c0_20, %c0_21], %44 {strides = array<i32>} : memref<8x128xf32, #tpu.memory_space<vmem>>, vector<8x128xf32>,
    } else {
    }
    return
  }
  func.func @transform_0(%arg0: i32, %arg1: i32) -> (i32, i32) {
    %c1_i32 = arith.constant 1 : i32
    %0 = arith.muli %arg0, %c1_i32 : i32
    %1 = arith.addi %0, %arg1 : i32
    %c0_i32 = arith.constant 0 : i32
    %c0_i32_0 = arith.constant 0 : i32
    return %1, %c0_i32 : i32, i32
  }
  func.func @transform_1(%arg0: i32, %arg1: i32) -> (i32, i32) {
    %c1_i32 = arith.constant 1 : i32
    %0 = arith.muli %arg0, %c1_i32 : i32
    %1 = arith.addi %0, %arg1 : i32
    %c0_i32 = arith.constant 0 : i32
    %c0_i32_0 = arith.constant 0 : i32
    return %1, %c0_i32 : i32, i32
  }
  func.func @transform_2(%arg0: i32, %arg1: i32) -> (i32, i32) {
    %c0_i32 = arith.constant 0 : i32
    %c0_i32_0 = arith.constant 0 : i32
    return %arg0, %c0_i32 : i32, i32
  }
}

</mosaic_0001>

<bundles_post_ra>
// kernel: tpu_custom_call.1
= control target key start
LH: loop header
LB: loop body
LE: loop exit
PB: predicated region body
PF: predicated region fallthrough
CT: control target
= control target key end

     0   :  { %vm54_vm0 = vcmask 261120   ;;  %s209_s0 = inlined_call_operand.vmem [shape: f32[8,32], index: 0, kind: input, shape index: {}]   ;;  %s210_s1 = inlined_call_operand.vmem [shape: s32[8,1], index: 1, kind: input, shape index: {}]   ;;  %s211_s2 = inlined_call_operand.hbm [shape: f32[8,128], index: 2, kind: output, shape index: {}]  }
   0x1   :  { %v52_v0 = vld [vmem:[%s209_s0] sm:$0xff] }
   0x2   :  { %7 = vsyncpa [#allocation4], 0  ;;  %v55_v1 = vsel %vm54_vm0, %v52_v0, -inf  ;;  %v167_v2 = vmov 0   ;;  %v53_v3 = vld [vmem:[%s210_s1] sm:$0xff]  ;;  %v66_v7 = vlaneseq  ;;  %vm50_vm2 = vcmask 7168  }
   0x3   :  { %136 = vset.pattern.permute.xlu0 %v167_v2  ;;  %v168_v14 = vmov 0.0   ;;  %s169_s0 = smov [#allocation3]  }
   0x4   :  { %56 = vmax.xlane.f32.xlu0 %v55_v1  ;;  %v67_v8 = vand.u32 127, %v66_v7  ;;  %51 = vst.msk [vmem:[#allocation2] sm:$0xff] %vm50_vm2, %v168_v14  ;;  %s111_s1 = sshll.u32 %s169_s0, 4  ;;  %s112_s1 = int_to_ptr.vmem [resolvable:$true] %s111_s1 }
   0x5   :  { %s143_s14 = scalar_lea.vmem %s112_s1, 128  ;;  %p148_p1 = scmp.lt.s32.totalorder %s112_s1, %s112_s1 }
   0x6   :  { %p144_p0 = scmp.ne.s32.totalorder %s112_s1, %s143_s14  ;;  %p149_p2 = scmp.lt.s32.totalorder %s143_s14, %s143_s14 }
   0x8   :  { %p150_p3 = por %p149_p2, %p148_p1 }
   0xa   :  { %p151_p4 = pnand %p150_p3, %p144_p0 }
   0xb   :  { %v85_v27 = vld [vmem:[#allocation2] sm:$0xff] }
  0x1a   :  { %69 = vperm.xlu0 %136, %v53_v3  }
  0x91   :  { %v57_v4 = vpop.xlane.xlu0 %56 }
  0x92   :  { %v58_v5 = vsub.f32 %v52_v0, %v57_v4 }
  0x94   :  { %v59_v6 = vmul.f32 1.442695, %v58_v5 }
  0x96   :  { %137 = vpow2.f32 %v59_v6 }
  0x99   :  { %v70_v9 = vpop.permute.xlu0 %69 }
  0x9a   :  { %vm71_vm1 = vcmp.eq.s32.totalorder %v67_v8, %v70_v9 }
  0x9b   :  { %v72_v11 = vsel %vm71_vm1, %v52_v0, 0.0 }
  0x9c   :  { %v73_v13 = vsel %vm54_vm0, %v72_v11, 0.0 }
  0xa0   :  { %v138_v10 = vpop.eup %137 }
  0xa1   :  { %v61_v12 = vsel %vm54_vm0, %v138_v10, 0.0 }
  0xa2   :  { %62 = vadd.xlane.f32.xlu1 %v61_v12 }
  0xa6   :  { %74 = vadd.xlane.f32.xlu1 %v73_v13 }
 0x12f   :  { %v63_v15 = vpop.xlane.xlu1 %62 }
 0x130   :  { %139 = vlog2.f32 %v63_v15 }
 0x133   :  { %v75_v18 = vpop.xlane.xlu1 %74 }
 0x13a   :  { %v140_v16 = vpop.eup %139 }
 0x13b   :  { %v65_v17 = vmul.f32 0.6931472, %v140_v16 }
 0x13d   :  { %v76_v19 = vadd.f32 %v65_v17, %v57_v4 }
 0x13f   :  { %v77_v20 = vsub.f32 %v76_v19, %v75_v18 }
 0x141   :  { %v78_v21 = vsub.f32 0.0, %v77_v20 }
 0x143   :  { %v79_v22 = vmul.f32 1.442695, %v78_v21 }
 0x145   :  { %141 = vpow2.f32 %v79_v22 }
 0x14f   :  { %v142_v23 = vpop.eup %141 }
 0x150   :  { %v81_v24 = vsub.f32 1.0, %v142_v23 }
 0x152   :  { %v82_v25 = vmax.f32 %v81_v24, 0.0 }
 0x154   :  { %v83_v26 = vmul.f32 %v82_v25, %v82_v25 }
 0x156   :  { %v84_v28 = vmul.f32 %v83_v26, %v77_v20 }
 0x158   :  { %v86_v29 = vadd.f32 %v85_v27, %v84_v28 }
 0x15a   :  { %88 = vst.msk [vmem:[#allocation2] sm:$0xff] %vm50_vm2, %v86_v29 }
 0x161   :  { %v92_v30 = vld [vmem:[#allocation2] sm:$0xff] }
 0x162   :  { %v93_v31 = vsel %vm50_vm2, %v92_v30, 0.0 }
 0x163   :  { %94 = vadd.xlane.f32.xlu1 %v93_v31 }
 0x1f0   :  { %v95_v32 = vpop.xlane.xlu1 %94 }
 0x1f1   :  { %v96_v33 = vrot.slane %v95_v32, 4 }
 0x1f3   :  { %v97_v34 = vadd.f32 %v96_v33, %v95_v32 }
 0x1f5   :  { %v98_v35 = vrot.slane %v97_v34, 2 }
 0x1f7   :  { %v99_v36 = vadd.f32 %v98_v35, %v97_v34 }
 0x1f9   :  { %v100_v37 = vrot.slane %v99_v36, 1 }
 0x1fb   :  { %v101_v38 = vadd.f32 %v100_v37, %v99_v36 }
 0x1fd   :  { %131 = vpush %v101_v38 }
 0x22e   :  { %s132_s13 = spop %131 }
 0x22f   :  { %v103_v39 = vstv %s132_s13 }
 0x230   :  { %104 = vst [vmem:[#allocation3] sm:$0xff] %v103_v39 }
 0x231   :  { %154 = shalt.err (!%p151_p4)
}
 0x232   :  { %s155_s17 = scalar_lea.hbm %s211_s2, 128 }
 0x233   :  { %p156_p5 = scmp.ne.s32.totalorder %s211_s2, %s155_s17  ;;  %p159_p6 = scmp.lt.u32.totalorder %s155_s17, %s211_s2 }
 0x235   :  { %p161_p7 = pnand %p159_p6, %p156_p5 }
 0x237   :  { %164 = shalt.err (!%p161_p7)
}
 0x238   :  { %114 = dma.vmem_to_hbm [thread:$0]  %s112_s1, 128, %s211_s2, [#allocation4]  }
 0x239   :  { %165 = dma.done.wait [#allocation4], 128  }
 0x23a   :  { %166 = vsyncadd [#allocation4], 4294967168 }
 0x23b   :  { %118 = vsyncpa [#allocation4], 1 }

</bundles_post_ra>
